<compile_context>
chip_gen: v7x
topology: tpu7x:2x2x1
jax: 0.10.0
libtpu: 0.0.40
codegen_flags: <defaults>
</compile_context>

<pallas_src>
import jax
import jax.numpy as jnp
from jax.experimental import pallas as pl
from jax.experimental.pallas import tpu as pltpu

DP = 128  # padded feature width == one full lane tile


def _round_up(n, m):
    return ((n + m - 1) // m) * m


# ---------------------------------------------------------------------------
# Kernel: fused 3-layer MLP on one (TB, 128) batch tile
#   x_ref: (TB, 128) bf16      w_ref: (3, 128, 128) bf16
#   b_ref: (8, 128) f32 (rows 0..2 used)      o_ref: (TB, 128) f32
# ---------------------------------------------------------------------------
def dqn_mlp_kernel(x_ref, w_ref, b_ref, o_ref):
    # layer_1 + activation_1  (bf16 MXU matmul, f32 accumulate / bias / ReLU)
    h1 = jnp.dot(x_ref[...], w_ref[0], preferred_element_type=jnp.float32)
    h1 = jnp.maximum(h1 + b_ref[0:1, :], 0.0)
    # layer_2 + activation_2
    h2 = jnp.dot(h1.astype(jnp.bfloat16), w_ref[1],
                 preferred_element_type=jnp.float32)
    h2 = jnp.maximum(h2 + b_ref[1:2, :], 0.0)
    # output layer (no activation)
    out = jnp.dot(h2.astype(jnp.bfloat16), w_ref[2],
                  preferred_element_type=jnp.float32) + b_ref[2:3, :]
    o_ref[...] = out.astype(o_ref.dtype)


# ---------------------------------------------------------------------------
# Wrapper
# ---------------------------------------------------------------------------
def dqn_forward(x, packed_params, action_dim, tb=512):
    """Pallas equivalent of DQNModel.forward(state) == self.q_net(state).

    x:             (batch, input_dim) float32
    packed_params: output of pack_params() — (3,128,128) bf16 W, (8,128) f32 B
    """
    w, b = packed_params
    batch, in_dim = x.shape

    # Batch tile: multiple of 16 rows (bf16 sublane packing; also covers the
    # f32 multiple-of-8 rule), never larger than the row-padded batch.
    batch16 = _round_up(batch, 16)
    tb = max(16, min(_round_up(tb, 16), batch16))
    b_pad = _round_up(batch, tb)
    n_tiles = b_pad // tb

    # Zero-pad batch rows + feature lanes once; matmul operand is bf16.
    xp = jnp.zeros((b_pad, DP), jnp.bfloat16)
    xp = xp.at[:batch, :in_dim].set(x.astype(jnp.bfloat16))

    # VMEM budget from the tile math (x/out double-buffered, weights resident),
    # generous headroom but far under v7x's 64 MiB per-TC VMEM.
    tile_bytes = (2 * tb * DP * 2        # x tile, bf16, double-buffered
                  + 2 * tb * DP * 4      # out tile, f32, double-buffered
                  + 2 * 3 * DP * DP * 2  # weight slab, bf16
                  + 2 * 8 * DP * 4)      # bias slab, f32
    vmem_limit = int(min(max(4 * tile_bytes, 8 << 20), 32 << 20))

    flops = 2 * b_pad * DP * DP * 3
    bytes_accessed = (xp.size * 2          # x (bf16)
                      + w.size * 2         # weights (bf16)
                      + b.size * 4         # biases (f32)
                      + b_pad * DP * 4)    # output (f32)

    out = pl.pallas_call(
        dqn_mlp_kernel,
        out_shape=jax.ShapeDtypeStruct((b_pad, DP), jnp.float32),
        grid=(n_tiles,),
        in_specs=[
            pl.BlockSpec((tb, DP), lambda i: (i, 0)),          # x: batch-tiled
            pl.BlockSpec((3, DP, DP), lambda i: (0, 0, 0)),    # weights: resident
            pl.BlockSpec((8, DP), lambda i: (0, 0)),           # biases: resident
        ],
        out_specs=pl.BlockSpec((tb, DP), lambda i: (i, 0)),
        compiler_params=pltpu.CompilerParams(
            dimension_semantics=("parallel",),   # v7x: split tiles across 2 TCs
            vmem_limit_bytes=vmem_limit,
        ),
        cost_estimate=pl.CostEstimate(
            flops=flops, transcendentals=0, bytes_accessed=bytes_accessed),
    )(xp, w, b)

    # Slice the lane-dense slab back to the logical (batch, action_dim) result.
    return out[:batch, :action_dim]


# ---------------------------------------------------------------------------
# Parameter construction / packing
# ---------------------------------------------------------------------------
def init_params(key, input_dim, hidden, action_dim):
    """Deterministic init mimicking nn.Linear's U(-1/sqrt(fan_in), 1/sqrt(fan_in)).
    Weights stored (in_features, out_features); semantics identical to PyTorch."""
    dims = [input_dim] + list(hidden) + [action_dim]
    params = []
    keys = jax.random.split(key, 2 * (len(dims) - 1))
    for i in range(len(dims) - 1):
        fan_in, fan_out = dims[i], dims[i + 1]
        bound = 1.0 / float(fan_in) ** 0.5
        w = jax.random.uniform(keys[2 * i], (fan_in, fan_out), jnp.float32, -bound, bound)
        b = jax.random.uniform(keys[2 * i + 1], (fan_out,), jnp.float32, -bound, bound)
        params.extend([w, b])
    return tuple(params)


def pack_params(params):
    """One-time offline packing: zero-pad every layer to 128x128, stack the
    bf16 weights into one (3,128,128) slab and the f32 biases into (8,128)."""
    w1, b1, w2, b2, w3, b3 = params
    W = jnp.zeros((3, DP, DP), jnp.bfloat16)
    W = W.at[0, :w1.shape[0], :w1.shape[1]].set(w1.astype(jnp.bfloat16))
    W = W.at[1, :w2.shape[0], :w2.shape[1]].set(w2.astype(jnp.bfloat16))
    W = W.at[2, :w3.shape[0], :w3.shape[1]].set(w3.astype(jnp.bfloat16))
    B = jnp.zeros((8, DP), jnp.float32)
    B = B.at[0, :b1.shape[0]].set(b1)
    B = B.at[1, :b2.shape[0]].set(b2)
    B = B.at[2, :b3.shape[0]].set(b3)
    return W, B


# ---------------------------------------------------------------------------
# References
# ---------------------------------------------------------------------------
def reference_forward_f32(x, params):
    w1, b1, w2, b2, w3, b3 = params
    h1 = jnp.maximum(x @ w1 + b1, 0.0)
    h2 = jnp.maximum(h1 @ w2 + b2, 0.0)
    return h2 @ w3 + b3


def reference_forward_bf16(x, packed_params, action_dim):
    """Mirrors the kernel's padded bf16/f32 math with plain XLA ops."""
    W, B = packed_params
    xp = jnp.zeros((x.shape[0], DP), jnp.bfloat16)
    xp = xp.at[:, :x.shape[1]].set(x.astype(jnp.bfloat16))
    h1 = jnp.maximum(jnp.dot(xp, W[0], preferred_element_type=jnp.float32) + B[0:1, :], 0.0)
    h2 = jnp.maximum(
        jnp.dot(h1.astype(jnp.bfloat16), W[1], preferred_element_type=jnp.float32) + B[1:2, :], 0.0)
    out = jnp.dot(h2.astype(jnp.bfloat16), W[2], preferred_element_type=jnp.float32) + B[2:3, :]
    return out[:, :action_dim]


if __name__ == "__main__":
    key = jax.random.PRNGKey(0)
    k_x1, k_x2, k_p = jax.random.split(key, 3)

    input_dim = 16       # DQNModel's input_dim[0]
    hidden = (24, 24)    # default net_arch
    action_dim = 4

    params = init_params(k_p, input_dim, hidden, action_dim)
    packed = pack_params(params)

    # Small batch (single grid tile; batch not a multiple of 8 -> row padding path).
    x_small = jax.random.normal(k_x1, (10, input_dim), dtype=jnp.float32)
    q_small = jax.block_until_ready(dqn_forward(x_small, packed, action_dim))
    assert q_small.shape == (10, action_dim)
    assert jnp.allclose(q_small, reference_forward_bf16(x_small, packed, action_dim),
                        atol=1e-3, rtol=1e-3)
    assert jnp.allclose(q_small, reference_forward_f32(x_small, params),
                        atol=5e-2, rtol=5e-2)

    # Larger batch to exercise the multi-tile grid / resident-weight path.
    x_big = jax.random.normal(k_x2, (300, input_dim), dtype=jnp.float32)
    q_big = jax.block_until_ready(dqn_forward(x_big, packed, action_dim, tb=128))
    assert q_big.shape == (300, action_dim)
    assert jnp.allclose(q_big, reference_forward_bf16(x_big, packed, action_dim),
                        atol=1e-3, rtol=1e-3)
    assert jnp.allclose(q_big, reference_forward_f32(x_big, params),
                        atol=5e-2, rtol=5e-2)

    print("KERNEL_OK")
</pallas_src>

<mosaic_0001>
module attributes {stable_mosaic.version = 11 : i64} {
  func.func @dqn_mlp_kernel(%arg0: i32, %arg1: memref<16x128xbf16, #tpu.memory_space<vmem>>, %arg2: memref<3x128x128xbf16, #tpu.memory_space<vmem>>, %arg3: memref<8x128xf32, #tpu.memory_space<vmem>>, %arg4: memref<16x128xf32, #tpu.memory_space<vmem>>) attributes {dimension_semantics = [#tpu.dimension_semantics<parallel>], iteration_bounds = array<i64: 1>, scalar_prefetch = 0 : i64, scratch_operands = 0 : i64, tpu.core_type = #tpu.core_type<tc>, window_params = [{transform_indices = @transform_0, window_bounds = array<i64: 16, 128>}, {pipeline_mode = #tpu.pipeline_mode<synchronous>, transform_indices = @transform_1, window_bounds = array<i64: 3, 128, 128>}, {pipeline_mode = #tpu.pipeline_mode<synchronous>, transform_indices = @transform_2, window_bounds = array<i64: 8, 128>}, {transform_indices = @transform_3, window_bounds = array<i64: 16, 128>}]} {
    %c0 = arith.constant 0 : index
    %c0_0 = arith.constant 0 : index
    %0 = vector.load %arg1[%c0, %c0_0] : memref<16x128xbf16, #tpu.memory_space<vmem>>, vector<16x128xbf16>
    %c0_1 = arith.constant 0 : index
    %c0_2 = arith.constant 0 : index
    %c0_3 = arith.constant 0 : index
    %1 = vector.load %arg2[%c0_1, %c0_2, %c0_3] : memref<3x128x128xbf16, #tpu.memory_space<vmem>>, vector<1x128x128xbf16>
    %2 = vector.shape_cast %1 : vector<1x128x128xbf16> to vector<128x128xbf16>
    %cst = arith.constant dense<0.000000e+00> : vector<16x128xf32>
    %3 = tpu.matmul %0, %2, %cst {dimension_numbers = #tpu.dot_dimension_numbers<[1], [0], [0], [1], [0, 0, 1, 1], [], []>} : vector<16x128xbf16>, vector<128x128xbf16>, vector<16x128xf32> -> vector<16x128xf32>
    %c0_4 = arith.constant 0 : index
    %c0_5 = arith.constant 0 : index
    %4 = vector.load %arg3[%c0_4, %c0_5] : memref<8x128xf32, #tpu.memory_space<vmem>>, vector<1x128xf32>
    %5 = vector.broadcast %4 : vector<1x128xf32> to vector<16x128xf32>
    %6 = arith.addf %3, %5 : vector<16x128xf32>
    %cst_6 = arith.constant 0.000000e+00 : f32
    %7 = vector.broadcast %cst_6 : f32 to vector<16x128xf32>
    %8 = arith.maximumf %6, %7 : vector<16x128xf32>
    %9 = arith.truncf %8 : vector<16x128xf32> to vector<16x128xbf16>
    %c1 = arith.constant 1 : index
    %c0_7 = arith.constant 0 : index
    %c0_8 = arith.constant 0 : index
    %10 = vector.load %arg2[%c1, %c0_7, %c0_8] : memref<3x128x128xbf16, #tpu.memory_space<vmem>>, vector<1x128x128xbf16>
    %11 = vector.shape_cast %10 : vector<1x128x128xbf16> to vector<128x128xbf16>
    %cst_9 = arith.constant dense<0.000000e+00> : vector<16x128xf32>
    %12 = tpu.matmul %9, %11, %cst_9 {dimension_numbers = #tpu.dot_dimension_numbers<[1], [0], [0], [1], [0, 0, 1, 1], [], []>} : vector<16x128xbf16>, vector<128x128xbf16>, vector<16x128xf32> -> vector<16x128xf32>
    %c1_10 = arith.constant 1 : index
    %c0_11 = arith.constant 0 : index
    %13 = vector.load %arg3[%c1_10, %c0_11] : memref<8x128xf32, #tpu.memory_space<vmem>>, vector<1x128xf32>
    %14 = vector.broadcast %13 : vector<1x128xf32> to vector<16x128xf32>
    %15 = arith.addf %12, %14 : vector<16x128xf32>
    %cst_12 = arith.constant 0.000000e+00 : f32
    %16 = vector.broadcast %cst_12 : f32 to vector<16x128xf32>
    %17 = arith.maximumf %15, %16 : vector<16x128xf32>
    %18 = arith.truncf %17 : vector<16x128xf32> to vector<16x128xbf16>
    %c2 = arith.constant 2 : index
    %c0_13 = arith.constant 0 : index
    %c0_14 = arith.constant 0 : index
    %19 = vector.load %arg2[%c2, %c0_13, %c0_14] : memref<3x128x128xbf16, #tpu.memory_space<vmem>>, vector<1x128x128xbf16>
    %20 = vector.shape_cast %19 : vector<1x128x128xbf16> to vector<128x128xbf16>
    %cst_15 = arith.constant dense<0.000000e+00> : vector<16x128xf32>
    %21 = tpu.matmul %18, %20, %cst_15 {dimension_numbers = #tpu.dot_dimension_numbers<[1], [0], [0], [1], [0, 0, 1, 1], [], []>} : vector<16x128xbf16>, vector<128x128xbf16>, vector<16x128xf32> -> vector<16x128xf32>
    %c2_16 = arith.constant 2 : index
    %c0_17 = arith.constant 0 : index
    %22 = vector.load %arg3[%c2_16, %c0_17] : memref<8x128xf32, #tpu.memory_space<vmem>>, vector<1x128xf32>
    %23 = vector.broadcast %22 : vector<1x128xf32> to vector<16x128xf32>
    %24 = arith.addf %21, %23 : vector<16x128xf32>
    %c0_18 = arith.constant 0 : index
    %c0_19 = arith.constant 0 : index
    %25 = vector.load %arg4[%c0_18, %c0_19] : memref<16x128xf32, #tpu.memory_space<vmem>>, vector<16x128xf32>
    tpu.vector_store %arg4[%c0_18, %c0_19], %24 {strides = array<i32>} : memref<16x128xf32, #tpu.memory_space<vmem>>, vector<16x128xf32>,
    return
  }
  func.func @transform_0(%arg0: i32) -> (i32, i32) {
    %c0_i32 = arith.constant 0 : i32
    %c0_i32_0 = arith.constant 0 : i32
    return %arg0, %c0_i32 : i32, i32
  }
  func.func @transform_1(%arg0: i32) -> (i32, i32, i32) {
    %c0_i32 = arith.constant 0 : i32
    %c0_i32_0 = arith.constant 0 : i32
    %c0_i32_1 = arith.constant 0 : i32
    %c0_i32_2 = arith.constant 0 : i32
    return %c0_i32, %c0_i32_0, %c0_i32_1 : i32, i32, i32
  }
  func.func @transform_2(%arg0: i32) -> (i32, i32) {
    %c0_i32 = arith.constant 0 : i32
    %c0_i32_0 = arith.constant 0 : i32
    %c0_i32_1 = arith.constant 0 : i32
    return %c0_i32, %c0_i32_0 : i32, i32
  }
  func.func @transform_3(%arg0: i32) -> (i32, i32) {
    %c0_i32 = arith.constant 0 : i32
    %c0_i32_0 = arith.constant 0 : i32
    return %arg0, %c0_i32 : i32, i32
  }
}

</mosaic_0001>

<bundles_post_ra>
// kernel: tpu_custom_call.1
= control target key start
LH: loop header
LB: loop body
LE: loop exit
PB: predicated region body
PF: predicated region fallthrough
CT: control target
= control target key end

     0   :  { %8 = vsyncpa [#allocation3], 0  ;;  %s780_s0 = inlined_call_operand.hbm [shape: bf16[16,128], index: 0, kind: input, shape index: {}]   ;;  %s781_s1 = inlined_call_operand.hbm [shape: bf16[3,128,128], index: 1, kind: input, shape index: {}]   ;;  %s782_s2 = inlined_call_operand.hbm [shape: f32[8,128], index: 2, kind: input, shape index: {}]   ;;  %s783_s3 = inlined_call_operand.hbm [shape: f32[16,128], index: 3, kind: output, shape index: {}]  }
   0x1   :  { %9 = vsyncpa [#allocation6], 0 }
   0x2   :  { %10 = vsyncpa [#allocation4], 0  ;;  %s665_s12 = smov [#allocation5]   ;;  %s666_s14 = smov [#allocation2]  }
   0x3   :  { %s28_s13 = sshll.u32 %s665_s12, 4  ;;  %s16_s15 = sshll.u32 %s666_s14, 4  ;;  %s29_s13 = int_to_ptr.vmem [resolvable:$true] %s28_s13  ;;  %s695_s15 = int_to_ptr.vmem [resolvable:$true] %s16_s15 }
   0x4   :  { %s571_s18 = scalar_lea.hbm %s781_s1, 3072 }
   0x5   :  { %p572_p0 = scmp.ne.s32.totalorder %s781_s1, %s571_s18  ;;  %p575_p1 = scmp.lt.u32.totalorder %s571_s18, %s781_s1 }
   0x7   :  { %p577_p2 = pnand %p575_p1, %p572_p0 }
   0x9   :  { %580 = shalt.err (!%p577_p2)
}
   0xa   :  { %s581_s23 = scalar_lea.vmem %s29_s13, 3072  ;;  %p586_p4 = scmp.lt.s32.totalorder %s29_s13, %s29_s13 }
   0xb   :  { %p582_p3 = scmp.ne.s32.totalorder %s29_s13, %s581_s23  ;;  %p587_p5 = scmp.lt.s32.totalorder %s581_s23, %s581_s23 }
   0xd   :  { %p588_p6 = por %p587_p5, %p586_p4 }
   0xf   :  { %p589_p7 = pnand %p588_p6, %p582_p3 }
  0x11   :  { %592 = shalt.err (!%p589_p7)
}
  0x12   :  { %s667_s24 = smov 64   ;;  %s668_s25 = smov 4  }
  0x13   :  { %34 = dma.hbm_to_vmem [thread:$0]  %s781_s1, 3072, %s29_s13, [#allocation6], %s667_s24, %s667_s24, %s668_s25  }
  0x14   :  { %s593_s30 = scalar_lea.hbm %s780_s0, 128 }
  0x15   :  { %p594_p8 = scmp.ne.s32.totalorder %s780_s0, %s593_s30  ;;  %p597_p9 = scmp.lt.u32.totalorder %s593_s30, %s780_s0 }
  0x17   :  { %p599_p10 = pnand %p597_p9, %p594_p8 }
  0x19   :  { %602 = shalt.err (!%p599_p10)
}
  0x1a   :  { %s603_s8 = scalar_lea.vmem %s695_s15, 128  ;;  %p608_p12 = scmp.lt.s32.totalorder %s695_s15, %s695_s15 }
  0x1b   :  { %p604_p11 = scmp.ne.s32.totalorder %s695_s15, %s603_s8  ;;  %p609_p13 = scmp.lt.s32.totalorder %s603_s8, %s603_s8 }
  0x1d   :  { %p610_p0 = por %p609_p13, %p608_p12 }
  0x1f   :  { %p611_p1 = pnand %p610_p0, %p604_p11 }
  0x21   :  { %614 = shalt.err (!%p611_p1)
}
  0x22   :  { %22 = dma.hbm_to_vmem [thread:$0]  %s780_s0, 128, %s695_s15, [#allocation3], %s667_s24, %s667_s24, %s668_s25  }
  0x23   :  { %s669_s10 = smov [#allocation7]   ;;  %s615_s14 = scalar_lea.hbm %s782_s2, 128 }
  0x24   :  { %s41_s11 = sshll.u32 %s669_s10, 4  ;;  %p616_p2 = scmp.ne.s32.totalorder %s782_s2, %s615_s14  ;;  %s42_s11 = int_to_ptr.vmem [resolvable:$true] %s41_s11 }
  0x25   :  { %p619_p3 = scmp.lt.u32.totalorder %s615_s14, %s782_s2 }
  0x27   :  { %p621_p4 = pnand %p619_p3, %p616_p2 }
  0x29   :  { %624 = shalt.err (!%p621_p4)
}
  0x2a   :  { %s625_s20 = scalar_lea.vmem %s42_s11, 128  ;;  %p630_p6 = scmp.lt.s32.totalorder %s42_s11, %s42_s11 }
  0x2b   :  { %p626_p5 = scmp.ne.s32.totalorder %s42_s11, %s625_s20  ;;  %p631_p7 = scmp.lt.s32.totalorder %s625_s20, %s625_s20 }
  0x2d   :  { %p632_p8 = por %p631_p7, %p630_p6 }
  0x2f   :  { %p633_p9 = pnand %p632_p8, %p626_p5 }
  0x31   :  { %636 = shalt.err (!%p633_p9)
}
  0x32   :  { %44 = dma.hbm_to_vmem [thread:$0]  %s782_s2, 128, %s42_s11, [#allocation6]  }
  0x33   :  { %659 = dma.done.wait [#allocation3], 128  }
  0x34   :  { %660 = vsyncadd [#allocation3], 4294967168 }
  0x35   :  { %661 = dma.done.wait [#allocation6], 3200  }
  0x36   :  { %662 = vsyncadd [#allocation6], 4294964096  ;;  %v670_v0 = vmov 0.0   ;;  %vm671_vm0 = vmmov 0   ;;  %v546_v1 = vld [vmem:[#allocation5] sm:$0xff]   ;;  %v547_v2 = vld [vmem:[#allocation5 + $0x8] sm:$0xff]  }
  0x37   :  { %476 = vmatprep.subr.bf16.mxu0 %v670_v0  ;;  %492 = vmatprep.mubr.msk.bf16.mxu0 %vm671_vm0, %v670_v0  ;;  %v548_v3 = vld [vmem:[#allocation5 + $0x10] sm:$0xff]   ;;  %v555_v4 = vld [vmem:[#allocation5 + $0x40] sm:$0xff]   ;;  %v549_v5 = vld [vmem:[#allocation5 + $0x18] sm:$0xff]   ;;  %s672_s2 = smov [#allocation8]  }
  0x38   :  { %496 = vmatprep.subr.bf16.mxu1 %v670_v0  ;;  %512 = vmatprep.mubr.msk.bf16.mxu1 %vm671_vm0, %v670_v0  ;;  %v556_v6 = vld [vmem:[#allocation5 + $0x48] sm:$0xff]   ;;  %v550_v7 = vld [vmem:[#allocation5 + $0x20] sm:$0xff]   ;;  %v557_v8 = vld [vmem:[#allocation5 + $0x50] sm:$0xff]   ;;  %s408_s21 = sshll.u32 %s672_s2, 4  ;;  %s409_s21 = int_to_ptr.vmem [resolvable:$true] %s408_s21 }
  0x39   :  { %477 = vmatpush3.bf16.msra.mxu0 %v546_v1  ;;  %497 = vmatpush3.bf16.msra.mxu1 %v555_v4  ;;  %v551_v9 = vld [vmem:[#allocation5 + $0x28] sm:$0xff]   ;;  %v558_v10 = vld [vmem:[#allocation5 + $0x58] sm:$0xff]   ;;  %v552_v11 = vld [vmem:[#allocation5 + $0x30] sm:$0xff]   ;;  %s637_s22 = scalar_lea.vmem %s409_s21, 256  ;;  %p642_p11 = scmp.lt.s32.totalorder %s409_s21, %s409_s21 }
  0x3a   :  { %478 = vmatprep.subr.bf16.mxu0 %v670_v0  ;;  %498 = vmatprep.subr.bf16.mxu1 %v670_v0  ;;  %v559_v12 = vld [vmem:[#allocation5 + $0x60] sm:$0xff]   ;;  %v553_v13 = vld [vmem:[#allocation5 + $0x38] sm:$0xff]   ;;  %v560_v14 = vld [vmem:[#allocation5 + $0x68] sm:$0xff]   ;;  %p638_p10 = scmp.ne.s32.totalorder %s409_s21, %s637_s22  ;;  %p643_p12 = scmp.lt.s32.totalorder %s637_s22, %s637_s22 }
  0x3b   :  { %v554_v15 = vld [vmem:[#allocation2] sm:$0xff]   ;;  %v561_v16 = vld [vmem:[#allocation5 + $0x70] sm:$0xff]   ;;  %v563_v18 = vld [vmem:[#allocation5 + $0x80] sm:$0xff]  }
  0x3c   :  { %v562_v17 = vld [vmem:[#allocation5 + $0x78] sm:$0xff]   ;;  %v564_v19 = vld [vmem:[#allocation5 + $0x88] sm:$0xff]   ;;  %v565_v20 = vld [vmem:[#allocation5 + $0x90] sm:$0xff]   ;;  %p644_p13 = por %p643_p12, %p642_p11 }
  0x3d   :  { %479 = vmatpush3.bf16.msra.mxu0 %v547_v2  ;;  %499 = vmatpush3.bf16.msra.mxu1 %v556_v6  ;;  %v566_v21 = vld [vmem:[#allocation5 + $0x98] sm:$0xff]   ;;  %v567_v22 = vld [vmem:[#allocation5 + $0xa0] sm:$0xff]   ;;  %v568_v23 = vld [vmem:[#allocation5 + $0xa8] sm:$0xff]  }
  0x3e   :  { %480 = vmatprep.subr.bf16.mxu0 %v670_v0  ;;  %500 = vmatprep.subr.bf16.mxu1 %v670_v0  ;;  %v421_v24 = vld [vmem:[#allocation7] ss:$0 sm:$0xff]  ;;  %v569_v34 = vld [vmem:[#allocation5 + $0xb0] sm:$0xff]   ;;  %v570_v35 = vld [vmem:[#allocation5 + $0xb8] sm:$0xff]   ;;  %p645_p0 = pnand %p644_p13, %p638_p10 }
  0x3f   :  { %v431_v36 = vld [vmem:[#allocation7 + $0x1] ss:$0 sm:$0xff]  ;;  %v440_v46 = vld [vmem:[#allocation7 + $0x2] ss:$0 sm:$0xff] }
  0x41   :  { %481 = vmatpush3.bf16.msra.mxu0 %v548_v3  ;;  %501 = vmatpush3.bf16.msra.mxu1 %v557_v8 }
  0x42   :  { %482 = vmatprep.subr.bf16.mxu0 %v670_v0  ;;  %502 = vmatprep.subr.bf16.mxu1 %v670_v0 }
  0x45   :  { %483 = vmatpush3.bf16.msra.mxu0 %v549_v5  ;;  %503 = vmatpush3.bf16.msra.mxu1 %v558_v10 }
  0x46   :  { %484 = vmatprep.subr.bf16.mxu0 %v670_v0  ;;  %504 = vmatprep.subr.bf16.mxu1 %v670_v0 }
  0x49   :  { %485 = vmatpush3.bf16.msra.mxu0 %v550_v7  ;;  %505 = vmatpush3.bf16.msra.mxu1 %v559_v12 }
  0x4a   :  { %486 = vmatprep.subr.bf16.mxu0 %v670_v0  ;;  %506 = vmatprep.subr.bf16.mxu1 %v670_v0 }
  0x4d   :  { %487 = vmatpush3.bf16.msra.mxu0 %v551_v9  ;;  %507 = vmatpush3.bf16.msra.mxu1 %v560_v14 }
  0x4e   :  { %488 = vmatprep.subr.bf16.mxu0 %v670_v0  ;;  %508 = vmatprep.subr.bf16.mxu1 %v670_v0 }
  0x51   :  { %489 = vmatpush3.bf16.msra.mxu0 %v552_v11  ;;  %509 = vmatpush3.bf16.msra.mxu1 %v561_v16 }
  0x52   :  { %490 = vmatprep.subr.bf16.mxu0 %v670_v0  ;;  %510 = vmatprep.subr.bf16.mxu1 %v670_v0 }
  0x55   :  { %491 = vmatpush3.bf16.msra.mxu0 %v553_v13  ;;  %511 = vmatpush3.bf16.msra.mxu1 %v562_v17 }
  0x56   :  { %516 = vmatprep.subr.bf16.mxu0 %v670_v0 }
  0x58   :  { %493 = vmatmul.mubr.bf16.vlgmr.msra.gmra.mrb[0].mxu0 %v554_v15 }
  0x59   :  { %532 = vmatprep.mubr.msk.bf16.mxu0 %vm671_vm0, %v670_v0  ;;  %517 = vmatpush3.bf16.msra.mxu0 %v563_v18 }
  0x5a   :  { %518 = vmatprep.subr.bf16.mxu0 %v670_v0 }
  0x5d   :  { %519 = vmatpush3.bf16.msra.mxu0 %v564_v19 }
  0x5e   :  { %520 = vmatprep.subr.bf16.mxu0 %v670_v0 }
  0x61   :  { %521 = vmatpush3.bf16.msra.mxu0 %v565_v20 }
  0x62   :  { %522 = vmatprep.subr.bf16.mxu0 %v670_v0 }
  0x65   :  { %523 = vmatpush3.bf16.msra.mxu0 %v566_v21 }
  0x66   :  { %524 = vmatprep.subr.bf16.mxu0 %v670_v0 }
  0x69   :  { %525 = vmatpush3.bf16.msra.mxu0 %v567_v22 }
  0x6a   :  { %526 = vmatprep.subr.bf16.mxu0 %v670_v0 }
  0x6d   :  { %527 = vmatpush3.bf16.msra.mxu0 %v568_v23 }
  0x6e   :  { %528 = vmatprep.subr.bf16.mxu0 %v670_v0 }
  0x71   :  { %529 = vmatpush3.bf16.msra.mxu0 %v569_v34 }
  0x72   :  { %530 = vmatprep.subr.bf16.mxu0 %v670_v0 }
  0x75   :  { %531 = vmatpush3.bf16.msra.mxu0 %v570_v35 }
 0x12b   :  { %v166_v25 = vpop.f32.mrb[0].mxu0 }
 0x12c   :  { %v167_v26 = vadd.f32 %v421_v24, %v166_v25  ;;  %v494_v27 = vpop.f32.mrb[1].mxu0 }
 0x12d   :  { %v169_v28 = vpop.f32.mrb[2].mxu0 }
 0x12e   :  { %v170_v29 = vadd.f32 %v421_v24, %v169_v28  ;;  %v495_v30 = vpop.f32.mrb[3].mxu0  ;;  %v173_v31 = vmax.f32 %v167_v26, 0.0 }
 0x130   :  { %v174_v32 = vmax.f32 %v170_v29, 0.0 }
 0x132   :  { %v175_v33 = vpack.c.bf16 %v174_v32, %v173_v31 }
 0x134   :  { %513 = vmatmul.mubr.bf16.vlgmr.msra.gmra.mrb[0].mxu1 %v175_v33 }
 0x207   :  { %v280_v37 = vpop.f32.mrb[0].mxu1 }
 0x208   :  { %v281_v38 = vadd.f32 %v431_v36, %v280_v37  ;;  %v514_v39 = vpop.f32.mrb[1].mxu1 }
 0x209   :  { %v283_v40 = vpop.f32.mrb[2].mxu1 }
 0x20a   :  { %v284_v41 = vadd.f32 %v431_v36, %v283_v40  ;;  %v515_v42 = vpop.f32.mrb[3].mxu1  ;;  %v287_v43 = vmax.f32 %v281_v38, 0.0 }
 0x20c   :  { %v288_v44 = vmax.f32 %v284_v41, 0.0 }
 0x20e   :  { %v289_v45 = vpack.c.bf16 %v288_v44, %v287_v43 }
 0x210   :  { %533 = vmatmul.mubr.bf16.vlgmr.msra.gmra.mrb[4].mxu0 %v289_v45 }
 0x2e3   :  { %v394_v47 = vpop.f32.mrb[4].mxu0 }
 0x2e4   :  { %v395_v48 = vadd.f32 %v440_v46, %v394_v47  ;;  %v534_v49 = vpop.f32.mrb[5].mxu0 }
 0x2e5   :  { %v397_v50 = vpop.f32.mrb[6].mxu0 }
 0x2e6   :  { %401 = vst [vmem:[#allocation8] sm:$0xff] %v395_v48  ;;  %v398_v51 = vadd.f32 %v440_v46, %v397_v50  ;;  %v535_v52 = vpop.f32.mrb[7].mxu0 }
 0x2e8   :  { %402 = vst [vmem:[#allocation8 + $0x8] sm:$0xff] %v398_v51 }
 0x2e9   :  { %648 = shalt.err (!%p645_p0)
}
 0x2ea   :  { %s649_s25 = scalar_lea.hbm %s783_s3, 256 }
 0x2eb   :  { %p650_p1 = scmp.ne.s32.totalorder %s783_s3, %s649_s25  ;;  %p653_p2 = scmp.lt.u32.totalorder %s649_s25, %s783_s3 }
 0x2ed   :  { %p655_p3 = pnand %p653_p2, %p650_p1 }
 0x2ef   :  { %658 = shalt.err (!%p655_p3)
}
 0x2f0   :  { %s673_s30 = smov 128   ;;  %s674_s4 = smov 8  }
 0x2f1   :  { %414 = dma.vmem_to_hbm [thread:$0]  %s409_s21, 256, %s783_s3, [#allocation4], %s673_s30, %s673_s30, %s674_s4  }
 0x2f2   :  { %663 = dma.done.wait [#allocation4], 256  }
 0x2f3   :  { %664 = vsyncadd [#allocation4], 4294967040 }
 0x2f4   :  { %418 = vsyncpa [#allocation3], 1 }
 0x2f5   :  { %419 = vsyncpa [#allocation6], 1 }
 0x2f6   :  { %420 = vsyncpa [#allocation4], 1 }

</bundles_post_ra>
